<compile_context>
chip_gen: v5e
topology: v5e:2x2
jax: 0.10.0
libtpu: 0.0.40
codegen_flags: <defaults>
</compile_context>

<pallas_src>
import functools

import jax
import jax.numpy as jnp
from jax.experimental import pallas as pl
from jax.experimental.pallas import tpu as pltpu


_MIN_CHUNK_BYTES = 512 * 1024        # below this, splitting is pure overhead
_MAX_CHUNK_BYTES = 16 * 1024 * 1024  # ~5 us per DMA at v7x HBM bandwidth


def _make_copy_kernel(num_main: int, chunk_rows: int, tail_rows: int):
    """Builds a kernel that DMAs one row-chunk of x_hbm -> o_hbm per grid step.

    All chunk sizes are static; only chunk *starts* are dynamic (program_id).
    """

    def _copy(x_hbm, o_hbm, sem, start, nrows):
        cp = pltpu.make_async_copy(
            x_hbm.at[pl.ds(start, nrows)],
            o_hbm.at[pl.ds(start, nrows)],
            sem,
        )
        cp.start()
        cp.wait()

    def kernel(x_hbm, o_hbm, sem):
        i = pl.program_id(0)
        if num_main > 0 and tail_rows > 0:
            # Full-size chunks plus one ragged tail chunk.
            @pl.when(i < num_main)
            def _():
                _copy(x_hbm, o_hbm, sem, i * chunk_rows, chunk_rows)

            @pl.when(i == num_main)
            def _():
                _copy(x_hbm, o_hbm, sem, num_main * chunk_rows, tail_rows)

        elif num_main > 0:
            # Evenly divided chunks (static start when there is only one).
            start = (i * chunk_rows) if num_main > 1 else 0
            _copy(x_hbm, o_hbm, sem, start, chunk_rows)

        else:
            # Single (possibly ragged) chunk covering the whole array.
            _copy(x_hbm, o_hbm, sem, 0, tail_rows)

    return kernel


@functools.partial(jax.jit, static_argnames=("min_chunk_bytes", "max_chunk_bytes"))
def identity_pallas(
    x: jax.Array,
    *,
    min_chunk_bytes: int = _MIN_CHUNK_BYTES,
    max_chunk_bytes: int = _MAX_CHUNK_BYTES,
) -> jax.Array:
    """Identity forward: returns a value-equal copy of x (same shape & dtype)."""
    orig_shape = x.shape
    total = x.size
    if total == 0:
        return x

    itemsize = jnp.dtype(x.dtype).itemsize
    nbytes = total * itemsize

    if total % 128 == 0:
        # Common case: lane-dense (rows, 128) view, chunked along rows.
        lane = 128
        rows = total // lane
        arr = x.reshape(rows, lane)
    else:
        # Ragged element count: flat 1-D view, copied with a single DMA
        # (no jnp.pad round trip -> exactly 2N bytes of HBM traffic).
        lane = 1
        rows = total
        arr = x.reshape(rows)

    if lane == 128:
        row_bytes = lane * itemsize
        target = max(min_chunk_bytes, min(max_chunk_bytes, nbytes // 8))
        chunk_rows = max(1, target // row_bytes)
        if chunk_rows >= rows:
            chunk_rows = rows
        else:
            # Keep chunk boundaries 8-row aligned (nicely aligned DMA offsets).
            chunk_rows = max(8, (chunk_rows // 8) * 8)
            chunk_rows = min(chunk_rows, rows)
    else:
        chunk_rows = rows  # single whole-array DMA

    num_main, tail_rows = divmod(rows, chunk_rows)
    grid = (num_main + (1 if tail_rows else 0),)

    # NOTE: if the caller donates x (jit donate_argnums), input_output_aliases
    # ={0: 0} would let XLA reuse the buffer and eliminate the copy entirely;
    # kept as a plain copy here because eager callers may still hold x.
    out = pl.pallas_call(
        _make_copy_kernel(num_main, chunk_rows, tail_rows),
        out_shape=jax.ShapeDtypeStruct(arr.shape, arr.dtype),
        grid=grid,
        in_specs=[pl.BlockSpec(memory_space=pl.ANY)],
        out_specs=pl.BlockSpec(memory_space=pl.ANY),
        scratch_shapes=[pltpu.SemaphoreType.DMA(())],
        compiler_params=pltpu.CompilerParams(
            dimension_semantics=("parallel",),
        ),
        cost_estimate=pl.CostEstimate(
            flops=0, transcendentals=0, bytes_accessed=2 * nbytes
        ),
    )(arr)

    return out.reshape(orig_shape)


if __name__ == "__main__":
    key = jax.random.PRNGKey(0)
    k0, k1, k2 = jax.random.split(key, 3)

    # Primary check: small NCHW-style input consistent with a conv-style layer.
    x = jax.random.normal(k0, (2, 4, 16, 16), dtype=jnp.float32)
    y = jax.block_until_ready(identity_pallas(x))
    assert y.shape == x.shape, (y.shape, x.shape)
    assert y.dtype == x.dtype, (y.dtype, x.dtype)
    assert jnp.array_equal(y, x), "Identity kernel output mismatch (main path)"

    # Ragged element count (not a multiple of 128): single whole-array DMA path.
    xr = jax.random.normal(k1, (3, 5, 7), dtype=jnp.float32)
    yr = jax.block_until_ready(identity_pallas(xr))
    assert yr.shape == xr.shape and yr.dtype == xr.dtype
    assert jnp.array_equal(yr, xr), "Identity kernel output mismatch (ragged path)"

    # Multi-chunk + tail path (shrunken chunk size so a small array exercises it).
    xm = jax.random.normal(k2, (36, 128), dtype=jnp.float32)
    ym = jax.block_until_ready(
        identity_pallas(xm, min_chunk_bytes=1024, max_chunk_bytes=4096)
    )
    assert ym.shape == xm.shape and ym.dtype == xm.dtype
    assert jnp.array_equal(ym, xm), "Identity kernel output mismatch (chunked path)"

    print("KERNEL_OK")
</pallas_src>

<mosaic_0001>
module attributes {stable_mosaic.version = 11 : i64} {
  func.func @kernel(%arg0: i32, %arg1: memref<16x128xf32, #tpu.memory_space<any>>, %arg2: memref<16x128xf32, #tpu.memory_space<any>>, %arg3: memref<!tpu.dma_semaphore, #tpu.memory_space<semaphore_mem>>) attributes {dimension_semantics = [#tpu.dimension_semantics<parallel>], iteration_bounds = array<i64: 1>, scalar_prefetch = 0 : i64, scratch_operands = 1 : i64, tpu.core_type = #tpu.core_type<tc>, window_params = [{}, {}]} {
    %c0_i32 = arith.constant 0 : i32
    %c0_i32_0 = arith.constant 0 : i32
    %0 = tpu.memref_slice %arg1[%c0_i32, %c0_i32_0] : memref<16x128xf32, #tpu.memory_space<any>> -> memref<16x128xf32, #tpu.memory_space<any>>
    %c0_i32_1 = arith.constant 0 : i32
    %c0_i32_2 = arith.constant 0 : i32
    %1 = tpu.memref_slice %arg2[%c0_i32_1, %c0_i32_2] : memref<16x128xf32, #tpu.memory_space<any>> -> memref<16x128xf32, #tpu.memory_space<any>>
    tpu.enqueue_dma source(%0 : memref<16x128xf32, #tpu.memory_space<any>>) target(%1 : memref<16x128xf32, #tpu.memory_space<any>>) target_semaphore(%arg3 : memref<!tpu.dma_semaphore, #tpu.memory_space<semaphore_mem>>)
    %c0_i32_3 = arith.constant 0 : i32
    %c0_i32_4 = arith.constant 0 : i32
    %2 = tpu.memref_slice %arg1[%c0_i32_3, %c0_i32_4] : memref<16x128xf32, #tpu.memory_space<any>> -> memref<16x128xf32, #tpu.memory_space<any>>
    %c0_i32_5 = arith.constant 0 : i32
    %c0_i32_6 = arith.constant 0 : i32
    %3 = tpu.memref_slice %arg2[%c0_i32_5, %c0_i32_6] : memref<16x128xf32, #tpu.memory_space<any>> -> memref<16x128xf32, #tpu.memory_space<any>>
    tpu.wait_dma2 semaphore(%arg3 : memref<!tpu.dma_semaphore, #tpu.memory_space<semaphore_mem>>) src(%2 : memref<16x128xf32, #tpu.memory_space<any>>) dst(%3 : memref<16x128xf32, #tpu.memory_space<any>>)
    return
  }
}

</mosaic_0001>

<bundles_post_ra>
// kernel: identity_pallas.1
= control target key start
LH: loop header
LB: loop body
LE: loop exit
PB: predicated region body
PF: predicated region fallthrough
CT: control target
= control target key end

     0   :  { %s64_s0 = inlined_call_operand.vmem [shape: f32[16,128], index: 0, kind: input, shape index: {}]   ;;  %s65_s1 = inlined_call_operand.vmem [shape: f32[16,128], index: 1, kind: output, shape index: {}]  }
   0x1   :  { %v16_v0 = vld [vmem:[%s64_s0] sm:$0xff]  ;;  %v18_v1 = vld [vmem:[%s64_s0 + $0x8] sm:$0xff] }
   0x2   :  { %17 = vst [vmem:[%s65_s1] sm:$0xff] %v16_v0 }
   0x3   :  { %19 = vst [vmem:[%s65_s1 + $0x8] sm:$0xff] %v18_v1 }
   0x4   :  { %25 = vsyncadd [#allocation2], 256 }
   0x5   :  { %40 = dma.done.wait [#allocation2], 256 }
   0x6   :  { %41 = vsyncadd [#allocation2], 4294967040 }
   0x7   :  { %29 = vsyncmov [#allocation2] }
   0xa   :  { %s30_s14 = vpop.sfrf %29 }
   0xb   :  { %p39_p0 = scmp.ne.s32.totalorder %s30_s14, 0 }
   0xd   :  { %34 = shalt.err (%p39_p0)  }

</bundles_post_ra>
